<compile_context>
chip_gen: v7x
topology: tpu7x:2x2x1
jax: 0.10.0
libtpu: 0.0.40
codegen_flags: <defaults>
</compile_context>

<pallas_src>
import functools
import math

import jax
import jax.numpy as jnp
from jax import lax
from jax.experimental import pallas as pl
from jax.experimental.pallas import tpu as pltpu

_SUBLANES = 8       # decoder output padded to a full sublane group (3 -> 8)
_NUM_CLASSES = 3


def _round_up(x, m):
    return (x + m - 1) // m * m


def _choose_row_tile(n_rows, row_tile):
    """Row tile: big (default 512), multiple of 256, but keep >= ~8 grid steps."""
    if n_rows <= 256:
        return n_rows                      # single grid step, exact-size block
    cap = max(256, _round_up(pl.cdiv(n_rows, 8), 256))
    return _round_up(max(256, min(int(row_tile), cap)), 256)


def _senti_head_kernel(eps, compute_dtype, gelu_dtype):
    inv_sqrt2 = 1.0 / math.sqrt(2.0)
    gelu_is_f32 = jnp.dtype(gelu_dtype) == jnp.dtype(jnp.float32)

    def kernel(x_ref, wd_ref, pvec_ref, wdec_ref, bdec_ref, o_ref):
        # ---- dense: x @ Wd  (MXU, f32 accumulation). Activation cast happens
        # here, in-kernel, so the wrapper never re-writes the activations. ----
        x = x_ref[...].astype(compute_dtype)
        h = jnp.dot(x, wd_ref[...], preferred_element_type=jnp.float32)

        bd = pvec_ref[0:1, :].astype(jnp.float32)      # dense bias  (1, H)
        gamma = pvec_ref[1:2, :].astype(jnp.float32)   # LN weight   (1, H)
        beta = pvec_ref[2:3, :].astype(jnp.float32)    # LN bias     (1, H)

        h = h + bd

        # ---- exact erf GELU (same formula as the PyTorch module). ----
        if gelu_is_f32:
            h = 0.5 * h * (1.0 + lax.erf(h * inv_sqrt2))
        else:
            # reduced-precision epilogue for v6e/v7x (VALU-bound regime)
            hg = h.astype(gelu_dtype)
            hg = 0.5 * hg * (1.0 + lax.erf(hg * inv_sqrt2))
            h = hg.astype(jnp.float32)

        # ---- layer norm over last dim, affine, f32 math ----
        mean = jnp.mean(h, axis=-1, keepdims=True)
        centered = h - mean
        var = jnp.mean(centered * centered, axis=-1, keepdims=True)
        h = centered * lax.rsqrt(var + eps)
        h = h * gamma + beta

        # ---- decoder, transposed: Wdec^T (8, H) x h (rt, H) contracted on H
        #      -> (8, rt), classes on sublanes, rows on lanes. Tiny writeback.
        out_t = lax.dot_general(
            wdec_ref[...], h.astype(compute_dtype),
            dimension_numbers=(((1,), (1,)), ((), ())),
            preferred_element_type=jnp.float32)
        out_t = out_t + bdec_ref[...]
        o_ref[...] = out_t.astype(o_ref.dtype)

    return kernel


def pack_params(params, compute_dtype=jnp.bfloat16):
    """Pack/cast parameters ONCE (do not call per forward pass).

    params:
      dense_w (H, H)  pre-transposed so y = x @ dense_w
      dense_b (H,), ln_w (H,), ln_b (H,)
      dec_w   (H, 3), bias (3,)
    """
    H = params["dense_w"].shape[0]
    dec_w = params["dec_w"]
    wdec_t = jnp.zeros((_SUBLANES, H), compute_dtype)
    wdec_t = wdec_t.at[:_NUM_CLASSES, :].set(dec_w.T.astype(compute_dtype))
    bdec_t = jnp.zeros((_SUBLANES, 1), jnp.float32)
    bdec_t = bdec_t.at[:_NUM_CLASSES, 0].set(params["bias"].astype(jnp.float32))
    return {
        "dense_w": params["dense_w"].astype(compute_dtype),           # (H, H)
        "pvec": jnp.stack([params["dense_b"], params["ln_w"],
                           params["ln_b"]]).astype(jnp.float32),      # (3, H)
        "dec_w_t": wdec_t,                                            # (8, H)
        "dec_b_t": bdec_t,                                            # (8, 1)
    }


def roberta_senti_head(features, packed, *, eps=1e-5, row_tile=512,
                       gelu_dtype=jnp.float32, vmem_limit_bytes=None):
    """features: [..., H] in native dtype; packed: output of pack_params()."""
    orig_shape = features.shape
    H = orig_shape[-1]
    x2d = features.reshape(-1, H)
    N = x2d.shape[0]
    compute_dtype = packed["dense_w"].dtype

    rt = _choose_row_tile(N, row_tile)
    grid = (pl.cdiv(N, rt),)

    if vmem_limit_bytes is None:
        xb = jnp.dtype(features.dtype).itemsize
        wb = jnp.dtype(compute_dtype).itemsize
        est = (2 * rt * H * xb                 # double-buffered activation tile
               + H * H * wb                    # single-buffered dense weight
               + 3 * H * 4                     # pvec
               + _SUBLANES * H * wb + _SUBLANES * 4
               + 2 * _SUBLANES * rt * 4        # double-buffered output tile
               + 6 * rt * H * 4)               # f32 intermediates headroom
        vmem_limit_bytes = int(min(max(est, 32 * 1024 * 1024),
                                   64 * 1024 * 1024))

    def const(shape):
        # grid-invariant operand: same block every step -> single buffer.
        return pl.BlockSpec(shape, lambda i: (0, 0),
                            pipeline_mode=pl.Buffered(1))

    out_t = pl.pallas_call(
        _senti_head_kernel(eps, compute_dtype, gelu_dtype),
        out_shape=jax.ShapeDtypeStruct((_SUBLANES, N), features.dtype),
        grid_spec=pltpu.PrefetchScalarGridSpec(
            num_scalar_prefetch=0,
            grid=grid,
            in_specs=[
                pl.BlockSpec((rt, H), lambda i: (i, 0)),   # activations
                const((H, H)),                             # dense W
                const((3, H)),                             # [dense_b; gamma; beta]
                const((_SUBLANES, H)),                     # decoder W^T (padded)
                const((_SUBLANES, 1)),                     # decoder bias (padded)
            ],
            out_specs=pl.BlockSpec((_SUBLANES, rt), lambda i: (0, i)),
        ),
        compiler_params=pltpu.CompilerParams(
            dimension_semantics=("parallel",),
            vmem_limit_bytes=vmem_limit_bytes,
        ),
    )(x2d, packed["dense_w"], packed["pvec"], packed["dec_w_t"],
      packed["dec_b_t"])

    logits = out_t[:_NUM_CLASSES, :].T                      # (N, 3), tiny copy
    return logits.reshape(*orig_shape[:-1], _NUM_CLASSES)


def init_params(key, hidden):
    """Deterministic synthetic parameters matching the module's shapes."""
    k1, k2, k3, k4, k5 = jax.random.split(key, 5)
    scale = 0.02
    return {
        # stored pre-transposed so the kernel computes x @ W (+ b)
        "dense_w": scale * jax.random.normal(k1, (hidden, hidden), jnp.float32),
        "dense_b": scale * jax.random.normal(k2, (hidden,), jnp.float32),
        "ln_w": jnp.ones((hidden,), jnp.float32)
        + 0.01 * jax.random.normal(k3, (hidden,), jnp.float32),
        "ln_b": 0.01 * jax.random.normal(k4, (hidden,), jnp.float32),
        "dec_w": scale * jax.random.normal(k5, (hidden, 3), jnp.float32),
        # nn.Parameter(torch.zeros(3))
        "bias": jnp.zeros((3,), jnp.float32),
    }


def reference(features, params, eps=1e-5):
    """Plain-JAX f32 reference of the forward pass (sanity check)."""
    x = features @ params["dense_w"] + params["dense_b"]
    x = 0.5 * x * (1.0 + lax.erf(x / jnp.sqrt(2.0)))
    mean = jnp.mean(x, axis=-1, keepdims=True)
    var = jnp.mean((x - mean) ** 2, axis=-1, keepdims=True)
    x = (x - mean) * lax.rsqrt(var + eps)
    x = x * params["ln_w"] + params["ln_b"]
    return x @ params["dec_w"] + params["bias"]


if __name__ == "__main__":
    # --- Case 1: tiny shapes, f32 compute -> exact-semantics parity check ---
    B, S, H = 2, 8, 32
    k_feat, k_par = jax.random.split(jax.random.PRNGKey(0))
    features = jax.random.normal(k_feat, (B, S, H), jnp.float32)
    params = init_params(k_par, H)
    packed_f32 = pack_params(params, compute_dtype=jnp.float32)

    out = roberta_senti_head(features, packed_f32, eps=1e-5)
    out = jax.block_until_ready(out)
    ref = reference(features, params)
    assert out.shape == (B, S, 3)
    assert jnp.allclose(out, ref, atol=1e-4, rtol=1e-4), "f32 mismatch vs reference"

    # --- Case 2: lane-aligned hidden, bf16 MXU fast path (f32 accumulate) ---
    B2, S2, H2 = 2, 16, 128
    k_feat2, k_par2 = jax.random.split(jax.random.PRNGKey(1))
    features2 = jax.random.normal(k_feat2, (B2, S2, H2), jnp.float32)
    params2 = init_params(k_par2, H2)
    packed_bf16 = pack_params(params2, compute_dtype=jnp.bfloat16)

    out2 = roberta_senti_head(features2, packed_bf16, eps=1e-5)
    out2 = jax.block_until_ready(out2)
    ref2 = reference(features2, params2)
    assert out2.shape == (B2, S2, 3)
    assert jnp.allclose(out2, ref2, atol=4e-2, rtol=4e-2), "bf16 mismatch vs reference"

    # --- Case 3: multi-step row grid (N=512 -> rt=256, 2 parallel steps) ---
    B3, S3, H3 = 2, 256, 64
    k_feat3, k_par3 = jax.random.split(jax.random.PRNGKey(2))
    features3 = jax.random.normal(k_feat3, (B3, S3, H3), jnp.float32)
    params3 = init_params(k_par3, H3)
    packed3 = pack_params(params3, compute_dtype=jnp.bfloat16)

    out3 = roberta_senti_head(features3, packed3, eps=1e-5)
    out3 = jax.block_until_ready(out3)
    ref3 = reference(features3, params3)
    assert out3.shape == (B3, S3, 3)
    assert jnp.allclose(out3, ref3, atol=4e-2, rtol=4e-2), "grid>1 mismatch vs reference"

    print("KERNEL_OK")
</pallas_src>

<mosaic_0001>
module attributes {stable_mosaic.version = 11 : i64} {
  func.func @kernel(%arg0: i32, %arg1: memref<16x32xf32, #tpu.memory_space<vmem>>, %arg2: memref<32x32xf32, #tpu.memory_space<vmem>>, %arg3: memref<3x32xf32, #tpu.memory_space<vmem>>, %arg4: memref<8x32xf32, #tpu.memory_space<vmem>>, %arg5: memref<8x1xf32, #tpu.memory_space<vmem>>, %arg6: memref<8x16xf32, #tpu.memory_space<vmem>>) attributes {dimension_semantics = [#tpu.dimension_semantics<parallel>], iteration_bounds = array<i64: 1>, scalar_prefetch = 0 : i64, scratch_operands = 0 : i64, tpu.core_type = #tpu.core_type<tc>, window_params = [{transform_indices = @transform_0, window_bounds = array<i64: 16, 32>}, {pipeline_mode = #tpu.pipeline_mode<synchronous>, transform_indices = @transform_1, window_bounds = array<i64: 32, 32>}, {pipeline_mode = #tpu.pipeline_mode<synchronous>, transform_indices = @transform_2, window_bounds = array<i64: 3, 32>}, {pipeline_mode = #tpu.pipeline_mode<synchronous>, transform_indices = @transform_3, window_bounds = array<i64: 8, 32>}, {pipeline_mode = #tpu.pipeline_mode<synchronous>, transform_indices = @transform_4, window_bounds = array<i64: 8, 1>}, {transform_indices = @transform_5, window_bounds = array<i64: 8, 16>}]} {
    %c0 = arith.constant 0 : index
    %c0_0 = arith.constant 0 : index
    %0 = vector.load %arg1[%c0, %c0_0] : memref<16x32xf32, #tpu.memory_space<vmem>>, vector<16x32xf32>
    %c0_1 = arith.constant 0 : index
    %c0_2 = arith.constant 0 : index
    %1 = vector.load %arg2[%c0_1, %c0_2] : memref<32x32xf32, #tpu.memory_space<vmem>>, vector<32x32xf32>
    %cst = arith.constant dense<0.000000e+00> : vector<16x32xf32>
    %2 = tpu.matmul %0, %1, %cst {dimension_numbers = #tpu.dot_dimension_numbers<[1], [0], [0], [1], [0, 0, 1, 1], [], []>} : vector<16x32xf32>, vector<32x32xf32>, vector<16x32xf32> -> vector<16x32xf32>
    %c0_3 = arith.constant 0 : index
    %c0_4 = arith.constant 0 : index
    %3 = vector.load %arg3[%c0_3, %c0_4] : memref<3x32xf32, #tpu.memory_space<vmem>>, vector<1x32xf32>
    %c1 = arith.constant 1 : index
    %c0_5 = arith.constant 0 : index
    %4 = vector.load %arg3[%c1, %c0_5] : memref<3x32xf32, #tpu.memory_space<vmem>>, vector<1x32xf32>
    %c2 = arith.constant 2 : index
    %c0_6 = arith.constant 0 : index
    %5 = vector.load %arg3[%c2, %c0_6] : memref<3x32xf32, #tpu.memory_space<vmem>>, vector<1x32xf32>
    %6 = vector.broadcast %3 : vector<1x32xf32> to vector<16x32xf32>
    %7 = arith.addf %2, %6 : vector<16x32xf32>
    %cst_7 = arith.constant 5.000000e-01 : f32
    %8 = vector.broadcast %cst_7 : f32 to vector<16x32xf32>
    %9 = arith.mulf %8, %7 : vector<16x32xf32>
    %cst_8 = arith.constant 0.707106769 : f32
    %10 = vector.broadcast %cst_8 : f32 to vector<16x32xf32>
    %11 = arith.mulf %7, %10 : vector<16x32xf32>
    %12 = math.erf %11 : vector<16x32xf32>
    %cst_9 = arith.constant 1.000000e+00 : f32
    %13 = vector.broadcast %cst_9 : f32 to vector<16x32xf32>
    %14 = arith.addf %13, %12 : vector<16x32xf32>
    %15 = arith.mulf %9, %14 : vector<16x32xf32>
    %cst_10 = arith.constant dense<0.000000e+00> : vector<16xf32>
    %16 = vector.multi_reduction <add>, %15, %cst_10 [1] : vector<16x32xf32> to vector<16xf32>
    %17 = vector.shape_cast %16 : vector<16xf32> to vector<16x1xf32>
    %cst_11 = arith.constant 3.200000e+01 : f32
    %18 = vector.broadcast %cst_11 : f32 to vector<16x1xf32>
    %19 = arith.divf %17, %18 : vector<16x1xf32>
    %20 = vector.broadcast %19 : vector<16x1xf32> to vector<16x32xf32>
    %21 = arith.subf %15, %20 : vector<16x32xf32>
    %22 = arith.mulf %21, %21 : vector<16x32xf32>
    %cst_12 = arith.constant dense<0.000000e+00> : vector<16xf32>
    %23 = vector.multi_reduction <add>, %22, %cst_12 [1] : vector<16x32xf32> to vector<16xf32>
    %24 = vector.shape_cast %23 : vector<16xf32> to vector<16x1xf32>
    %cst_13 = arith.constant 3.200000e+01 : f32
    %25 = vector.broadcast %cst_13 : f32 to vector<16x1xf32>
    %26 = arith.divf %24, %25 : vector<16x1xf32>
    %cst_14 = arith.constant 9.99999974E-6 : f32
    %27 = vector.broadcast %cst_14 : f32 to vector<16x1xf32>
    %28 = arith.addf %26, %27 : vector<16x1xf32>
    %29 = math.rsqrt %28 : vector<16x1xf32>
    %30 = vector.broadcast %29 : vector<16x1xf32> to vector<16x32xf32>
    %31 = arith.mulf %21, %30 : vector<16x32xf32>
    %32 = vector.broadcast %4 : vector<1x32xf32> to vector<16x32xf32>
    %33 = arith.mulf %31, %32 : vector<16x32xf32>
    %34 = vector.broadcast %5 : vector<1x32xf32> to vector<16x32xf32>
    %35 = arith.addf %33, %34 : vector<16x32xf32>
    %c0_15 = arith.constant 0 : index
    %c0_16 = arith.constant 0 : index
    %36 = vector.load %arg4[%c0_15, %c0_16] : memref<8x32xf32, #tpu.memory_space<vmem>>, vector<8x32xf32>
    %cst_17 = arith.constant dense<0.000000e+00> : vector<8x16xf32>
    %37 = tpu.matmul %36, %35, %cst_17 {dimension_numbers = #tpu.dot_dimension_numbers<[1], [1], [0], [0], [0, 0, 1, 0], [], []>} : vector<8x32xf32>, vector<16x32xf32>, vector<8x16xf32> -> vector<8x16xf32>
    %c0_18 = arith.constant 0 : index
    %c0_19 = arith.constant 0 : index
    %38 = vector.load %arg5[%c0_18, %c0_19] : memref<8x1xf32, #tpu.memory_space<vmem>>, vector<8x1xf32>
    %39 = vector.broadcast %38 : vector<8x1xf32> to vector<8x16xf32>
    %40 = arith.addf %37, %39 : vector<8x16xf32>
    %c0_20 = arith.constant 0 : index
    %c0_21 = arith.constant 0 : index
    %41 = vector.load %arg6[%c0_20, %c0_21] : memref<8x16xf32, #tpu.memory_space<vmem>>, vector<8x16xf32>
    tpu.vector_store %arg6[%c0_20, %c0_21], %40 {strides = array<i32>} : memref<8x16xf32, #tpu.memory_space<vmem>>, vector<8x16xf32>,
    return
  }
  func.func @transform_0(%arg0: i32) -> (i32, i32) {
    %c0_i32 = arith.constant 0 : i32
    %c0_i32_0 = arith.constant 0 : i32
    return %arg0, %c0_i32 : i32, i32
  }
  func.func @transform_1(%arg0: i32) -> (i32, i32) {
    %c0_i32 = arith.constant 0 : i32
    %c0_i32_0 = arith.constant 0 : i32
    %c0_i32_1 = arith.constant 0 : i32
    return %c0_i32, %c0_i32_0 : i32, i32
  }
  func.func @transform_2(%arg0: i32) -> (i32, i32) {
    %c0_i32 = arith.constant 0 : i32
    %c0_i32_0 = arith.constant 0 : i32
    %c0_i32_1 = arith.constant 0 : i32
    return %c0_i32, %c0_i32_0 : i32, i32
  }
  func.func @transform_3(%arg0: i32) -> (i32, i32) {
    %c0_i32 = arith.constant 0 : i32
    %c0_i32_0 = arith.constant 0 : i32
    %c0_i32_1 = arith.constant 0 : i32
    return %c0_i32, %c0_i32_0 : i32, i32
  }
  func.func @transform_4(%arg0: i32) -> (i32, i32) {
    %c0_i32 = arith.constant 0 : i32
    %c0_i32_0 = arith.constant 0 : i32
    %c0_i32_1 = arith.constant 0 : i32
    return %c0_i32, %c0_i32_0 : i32, i32
  }
  func.func @transform_5(%arg0: i32) -> (i32, i32) {
    %c0_i32 = arith.constant 0 : i32
    %c0_i32_0 = arith.constant 0 : i32
    return %c0_i32, %arg0 : i32, i32
  }
}

</mosaic_0001>

<bundles_post_ra>
// kernel: tpu_custom_call.1
= control target key start
LH: loop header
LB: loop body
LE: loop exit
PB: predicated region body
PF: predicated region fallthrough
CT: control target
= control target key end

     0   :  { %10 = vsyncpa [#allocation3], 0  ;;  %s533_s0 = inlined_call_operand.hbm [shape: f32[16,32], index: 0, kind: input, shape index: {}]   ;;  %s534_s1 = inlined_call_operand.hbm [shape: f32[32,32], index: 1, kind: input, shape index: {}]   ;;  %s535_s2 = inlined_call_operand.vmem [shape: f32[3,32], index: 2, kind: input, shape index: {}]   ;;  %s536_s3 = inlined_call_operand.vmem [shape: f32[8,32], index: 3, kind: input, shape index: {}]   ;;  %s537_s4 = inlined_call_operand.vmem [shape: f32[8,1], index: 4, kind: input, shape index: {}]   ;;  %s538_s5 = inlined_call_operand.hbm [shape: f32[8,16], index: 5, kind: output, shape index: {}]  }
   0x1   :  { %11 = vsyncpa [#allocation6], 0 }
   0x2   :  { %12 = vsyncpa [#allocation4], 0  ;;  %s434_s18 = smov [#allocation2]   ;;  %s362_s22 = scalar_lea.hbm %s533_s0, 256 }
   0x3   :  { %s18_s19 = sshll.u32 %s434_s18, 4  ;;  %p363_p0 = scmp.ne.s32.totalorder %s533_s0, %s362_s22  ;;  %s19_s19 = int_to_ptr.vmem [resolvable:$true] %s18_s19 }
   0x4   :  { %p366_p1 = scmp.lt.u32.totalorder %s362_s22, %s533_s0 }
   0x6   :  { %p368_p2 = pnand %p366_p1, %p363_p0 }
   0x8   :  { %371 = shalt.err (!%p368_p2)
}
   0x9   :  { %s372_s27 = scalar_lea.vmem %s19_s19, 256  ;;  %p377_p4 = scmp.lt.s32.totalorder %s19_s19, %s19_s19 }
   0xa   :  { %p373_p3 = scmp.ne.s32.totalorder %s19_s19, %s372_s27  ;;  %p378_p5 = scmp.lt.s32.totalorder %s372_s27, %s372_s27 }
   0xc   :  { %p379_p6 = por %p378_p5, %p377_p4 }
   0xe   :  { %p380_p7 = pnand %p379_p6, %p373_p3 }
  0x10   :  { %383 = shalt.err (!%p380_p7)
}
  0x11   :  { %s435_s28 = smov 128   ;;  %s436_s29 = smov 8  }
  0x12   :  { %24 = dma.hbm_to_vmem [thread:$0]  %s533_s0, 256, %s19_s19, [#allocation3], %s435_s28, %s435_s28, %s436_s29  }
  0x13   :  { %s437_s7 = smov [#allocation5]   ;;  %s384_s11 = scalar_lea.hbm %s534_s1, 512 }
  0x14   :  { %s30_s8 = sshll.u32 %s437_s7, 4  ;;  %p385_p8 = scmp.ne.s32.totalorder %s534_s1, %s384_s11  ;;  %s31_s8 = int_to_ptr.vmem [resolvable:$true] %s30_s8 }
  0x15   :  { %p388_p9 = scmp.lt.u32.totalorder %s384_s11, %s534_s1 }
  0x17   :  { %p390_p10 = pnand %p388_p9, %p385_p8 }
  0x19   :  { %393 = shalt.err (!%p390_p10)
}
  0x1a   :  { %s394_s16 = scalar_lea.vmem %s31_s8, 512  ;;  %p399_p12 = scmp.lt.s32.totalorder %s31_s8, %s31_s8 }
  0x1b   :  { %p395_p11 = scmp.ne.s32.totalorder %s31_s8, %s394_s16  ;;  %p400_p13 = scmp.lt.s32.totalorder %s394_s16, %s394_s16 }
  0x1d   :  { %p401_p0 = por %p400_p13, %p399_p12 }
  0x1f   :  { %p402_p1 = pnand %p401_p0, %p395_p11 }
  0x21   :  { %405 = shalt.err (!%p402_p1)
}
  0x22   :  { %36 = dma.hbm_to_vmem [thread:$0]  %s534_s1, 512, %s31_s8, [#allocation6], %s435_s28, %s435_s28, %s436_s29  }
  0x23   :  { %428 = dma.done.wait [#allocation3], 256  }
  0x24   :  { %429 = vsyncadd [#allocation3], 4294967040 }
  0x25   :  { %430 = dma.done.wait [#allocation6], 512  }
  0x26   :  { %431 = vsyncadd [#allocation6], 4294966784  ;;  %vm62_vm0 = vcmask 261120   ;;  %v51_v0 = vld [vmem:[#allocation5] sm:$0xff]  ;;  %v52_v1 = vld [vmem:[#allocation5 + $0x8] sm:$0xff]  ;;  %v438_v35 = vmov 0.0|0.0  }
  0x27   :  { %v53_v2 = vld [vmem:[#allocation5 + $0x10] sm:$0xff]  ;;  %v332_v3 = vpack.c.bf16 %v52_v1, %v51_v0  ;;  %v54_v4 = vld [vmem:[#allocation5 + $0x18] sm:$0xff]  ;;  %340 = vmatprep.subr.bf16.mxu1 %v438_v35  ;;  %vm439_vm1 = vmmov 0   ;;  %v440_v36 = vmov 0.0   ;;  %v441_v38 = vmov 0   ;;  %vm342_vm2 = vmpackc.low %vm62_vm0, %vm62_vm0  ;;  %s442_s26 = smov [#allocation7]  }
  0x28   :  { %v49_v5 = vld [vmem:[#allocation2] sm:$0xff]  ;;  %v336_v6 = vpack.c.bf16 %v54_v4, %v53_v2  ;;  %v50_v7 = vld [vmem:[#allocation2 + $0x8] sm:$0xff]  ;;  %329 = vmatprep.mubr.msk.f32.mxu1 %vm439_vm1, %v440_v36  ;;  %353 = vset.pattern.permute.xlu0 %v441_v38  ;;  %s287_s27 = sshll.u32 %s442_s26, 4  ;;  %vm279_vm3 = vcmask 130048   ;;  %s288_s27 = int_to_ptr.vmem [resolvable:$true] %s287_s27 }
  0x29   :  { %322 = vmatprep.mubr.msk.f32.mxu0 %vm62_vm0, %v49_v5  ;;  %333 = vmatprep.subr.bf16.mxu0 %v332_v3  ;;  %v297_v8 = vld [vmem:[%s535_s2] ss:$0 sm:$0xff]  ;;  %v300_v47 = vld [vmem:[%s535_s2 + $0x1] ss:$0 sm:$0xff]  ;;  %v301_v51 = vld [vmem:[%s535_s2 + $0x2] ss:$0 sm:$0xff]  ;;  %p411_p3 = scmp.lt.s32.totalorder %s288_s27, %s288_s27 }
  0x2a   :  { %335 = vmatpush3.bf16.msra.mxu0 %v332_v3  ;;  %v194_v37 = vld [vmem:[%s537_s4] sm:$0xff]  ;;  %s406_s2 = scalar_lea.vmem %s288_s27, 128 }
  0x2b   :  { %337 = vmatprep.subr.bf16.mxu0 %v336_v6  ;;  %v193_v56 = vld [vmem:[%s536_s3] sm:$0xff]  ;;  %p407_p2 = scmp.ne.s32.totalorder %s288_s27, %s406_s2  ;;  %p412_p4 = scmp.lt.s32.totalorder %s406_s2, %s406_s2 }
  0x2d   :  { %p413_p5 = por %p412_p4, %p411_p3 }
  0x2e   :  { %339 = vmatpush3.bf16.msra.mxu0 %v336_v6 }
  0x2f   :  { %p414_p6 = pnand %p413_p5, %p407_p2 }
  0x31   :  { %323 = vmatmul.mubr.msk.f32.vlgmr.msra.gmra.mrb[0].mxu0 %vm62_vm0, %v50_v7 }
 0x104   :  { %v324_v9 = vpop.f32.mrb[0].mxu0 }
 0x105   :  { %v141_v10 = vadd.f32 %v324_v9, %v297_v8  ;;  %v135_v11 = vpop.f32.mrb[1].mxu0 }
 0x106   :  { %v136_v12 = vadd.f32 %v297_v8, %v135_v11 }
 0x107   :  { %v147_v13 = vmul.f32 0.70710677, %v141_v10  ;;  %v145_v20 = vmul.f32 0.5, %v141_v10 }
 0x108   :  { %v146_v14 = vmul.f32 0.70710677, %v136_v12  ;;  %v144_v17 = vmul.f32 0.5, %v136_v12 }
 0x109   :  { %354 = verf.f32 %v147_v13 }
 0x10a   :  { %356 = verf.f32 %v146_v14 }
 0x113   :  { %v355_v15 = vpop.eup %354 }
 0x114   :  { %v357_v16 = vpop.eup %356  ;;  %v151_v19 = vadd.f32 1.0, %v355_v15 }
 0x115   :  { %v150_v18 = vadd.f32 1.0, %v357_v16 }
 0x116   :  { %v153_v23 = vmul.f32 %v151_v19, %v145_v20 }
 0x117   :  { %v152_v21 = vmul.f32 %v150_v18, %v144_v17 }
 0x118   :  { %v157_v24 = vsel %vm62_vm0, %v153_v23, 0.0 }
 0x119   :  { %v154_v22 = vsel %vm62_vm0, %v152_v21, 0.0 }
 0x11a   :  { %155 = vadd.xlane.f32.xlu0 %v154_v22 }
 0x11e   :  { %158 = vadd.xlane.f32.xlu0 %v157_v24 }
 0x134   :  { %197 = vperm.xlu0 %353, %v194_v37  }
 0x1a7   :  { %v156_v25 = vpop.xlane.xlu0 %155 }
 0x1a8   :  { %v161_v26 = vmul.f32 0.03125, %v156_v25 }
 0x1aa   :  { %v163_v27 = vsub.f32 %v152_v21, %v161_v26 }
 0x1ab   :  { %v159_v28 = vpop.xlane.xlu0 %158 }
 0x1ac   :  { %v162_v29 = vmul.f32 0.03125, %v159_v28  ;;  %v165_v30 = vmul.f32 %v163_v27, %v163_v27 }
 0x1ae   :  { %v164_v31 = vsub.f32 %v153_v23, %v162_v29  ;;  %v167_v32 = vsel %vm62_vm0, %v165_v30, 0.0 }
 0x1af   :  { %168 = vadd.xlane.f32.xlu1 %v167_v32 }
 0x1b0   :  { %v166_v33 = vmul.f32 %v164_v31, %v164_v31 }
 0x1b2   :  { %v170_v34 = vsel %vm62_vm0, %v166_v33, 0.0 }
 0x1b3   :  { %171 = vadd.xlane.f32.xlu1 %v170_v34  ;;  %v198_v57 = vpop.permute.xlu0 %197 }
 0x23c   :  { %v169_v39 = vpop.xlane.xlu1 %168 }
 0x23d   :  { %v173_v40 = vmul.f32 0.03125, %v169_v39 }
 0x23f   :  { %v175_v41 = vadd.f32 1e-05, %v173_v40 }
 0x240   :  { %v172_v42 = vpop.xlane.xlu1 %171 }
 0x241   :  { %358 = vrsqrt.f32 %v175_v41  ;;  %v174_v43 = vmul.f32 0.03125, %v172_v42 }
 0x243   :  { %v176_v44 = vadd.f32 1e-05, %v174_v43 }
 0x245   :  { %360 = vrsqrt.f32 %v176_v44 }
 0x24b   :  { %v359_v45 = vpop.eup %358 }
 0x24c   :  { %v179_v46 = vmul.f32 %v359_v45, %v163_v27 }
 0x24e   :  { %v185_v50 = vmul.f32 %v300_v47, %v179_v46 }
 0x24f   :  { %v361_v48 = vpop.eup %360 }
 0x250   :  { %v180_v49 = vmul.f32 %v361_v48, %v164_v31  ;;  %v191_v53 = vadd.f32 %v301_v51, %v185_v50 }
 0x252   :  { %v186_v52 = vmul.f32 %v300_v47, %v180_v49 }
 0x254   :  { %v192_v54 = vadd.f32 %v301_v51, %v186_v52 }
 0x256   :  { %v341_v55 = vpack.c.bf16 %v192_v54, %v191_v53 }
 0x258   :  { %343 = vmatpush3.bf16.xpose.msk.msra.mxu1 %vm342_vm2, %v341_v55 }
 0x25f   :  { %330 = vmatmul.mubr.msk.f32.vlgmr.msra.gmra.mrb[0].mxu1 %vm62_vm0, %v193_v56 }
 0x332   :  { %v275_v58 = vpop.f32.mrb[0].mxu1 }
 0x333   :  { %v276_v59 = vadd.f32 %v275_v58, %v198_v57  ;;  %v331_v60 = vpop.f32.mrb[1].mxu1 }
 0x335   :  { %280 = vst.msk [vmem:[#allocation7] sm:$0xff] %vm279_vm3, %v276_v59 }
 0x336   :  { %417 = shalt.err (!%p414_p6)
}
 0x337   :  { %s418_s29 = scalar_lea.hbm %s538_s5, 128 }
 0x338   :  { %p419_p7 = scmp.ne.s32.totalorder %s538_s5, %s418_s29  ;;  %p422_p8 = scmp.lt.u32.totalorder %s418_s29, %s538_s5 }
 0x33a   :  { %p424_p9 = pnand %p422_p8, %p419_p7 }
 0x33c   :  { %427 = shalt.err (!%p424_p9)
}
 0x33d   :  { %290 = dma.vmem_to_hbm [thread:$0]  %s288_s27, 128, %s538_s5, [#allocation4]  }
 0x33e   :  { %432 = dma.done.wait [#allocation4], 128  }
 0x33f   :  { %433 = vsyncadd [#allocation4], 4294967168 }
 0x340   :  { %294 = vsyncpa [#allocation3], 1 }
 0x341   :  { %295 = vsyncpa [#allocation6], 1 }
 0x342   :  { %296 = vsyncpa [#allocation4], 1 }

</bundles_post_ra>
